<compile_context>
chip_gen: v7x
topology: tpu7x:2x2x1
jax: 0.10.0
libtpu: 0.0.40
codegen_flags: <defaults>
</compile_context>

<pallas_src>
import functools

import jax
import jax.numpy as jnp
from jax.experimental import pallas as pl
from jax.experimental.pallas import tpu as pltpu


# ---------------------------------------------------------------------------
# Fused Pallas kernel: num_layer GIN layers + scatter-mean pool, no grid,
# layers statically unrolled, all operands resident in VMEM.
# ---------------------------------------------------------------------------

def fused_gnn_kernel(a_ref, h0_ref, e_ref, w1_ref, b1_ref, w2_ref, b2_ref,
                     p_ref, mask_ref, o_ref, *, num_layer):
    h = h0_ref[...]                                   # (N, D) f32 carried value
    a = a_ref[...]                                    # (N, N) bf16, loaded once

    for l in range(num_layer):                        # static unroll
        # GIN aggregation: A @ h  +  per-target-node edge-embedding sum
        aggr = jnp.dot(a, h.astype(jnp.bfloat16),
                       preferred_element_type=jnp.float32)
        aggr = aggr + e_ref[l].astype(jnp.float32)

        # MLP first half: Linear(D, 2D) + ReLU
        z = jnp.dot(aggr.astype(jnp.bfloat16), w1_ref[l],
                    preferred_element_type=jnp.float32) + b1_ref[l]
        z = jnp.maximum(z, 0.0)                       # (N, 2D) f32

        if l < num_layer - 1:
            # Linear(2D, D) with eval-BatchNorm folded, then inter-layer ReLU
            # (JK='last': ReLU on every layer except the final one).
            h = jnp.dot(z.astype(jnp.bfloat16), w2_ref[l],
                        preferred_element_type=jnp.float32) + b2_ref[l]
            h = jnp.maximum(h, 0.0)
        else:
            # Last layer: pool straight from the live value and hoist the
            # scatter-mean before the final Linear(2D, D):
            #   P @ (relu(.) @ w2 + b2) == (P @ relu(.)) @ w2 + rowsum(P) * b2
            # rowsum(P) is 1 for non-empty motifs, 0 for empty ones (mask_ref),
            # so empty motif rows remain exactly 0 (scatter-mean semantics).
            pooled = jnp.dot(p_ref[...], z,
                             preferred_element_type=jnp.float32)    # (M, 2D) f32
            out = jnp.dot(pooled.astype(jnp.bfloat16), w2_ref[l],
                          preferred_element_type=jnp.float32)       # (M, D) f32
            out = out + mask_ref[...] * b2_ref[l]
            o_ref[...] = out.astype(o_ref.dtype)


def fused_gnn_forward(A, h0, e_agg, w1, b1, w2, b2, P, mask):
    """A: (N,N) bf16; h0: (N,D) f32; e_agg: (L,N,D) bf16;
    w1: (L,D,2D) bf16; b1: (L,1,2D) f32; w2: (L,2D,D) bf16 (BN-folded);
    b2: (L,1,D) f32 (BN-folded); P: (M,N) f32; mask: (M,1) f32.
    Returns (M, D) f32."""
    L, N, D = e_agg.shape
    H = w1.shape[-1]
    M = P.shape[0]

    # per non-final layer: A@h + w1 + w2; final layer: A@h + w1 + pool + w2
    flops = (L * (2 * N * N * D + 2 * N * D * H)
             + (L - 1) * 2 * N * H * D
             + 2 * M * N * H + 2 * M * H * D)
    bytes_accessed = int(
        A.size * A.dtype.itemsize + h0.size * h0.dtype.itemsize +
        e_agg.size * e_agg.dtype.itemsize + w1.size * w1.dtype.itemsize +
        b1.size * b1.dtype.itemsize + w2.size * w2.dtype.itemsize +
        b2.size * b2.dtype.itemsize + P.size * P.dtype.itemsize +
        mask.size * mask.dtype.itemsize + M * D * 4)

    kernel = functools.partial(fused_gnn_kernel, num_layer=L)

    return pl.pallas_call(
        kernel,
        out_shape=jax.ShapeDtypeStruct((M, D), jnp.float32),
        # no grid: every operand is a single fully-resident VMEM block
        compiler_params=pltpu.CompilerParams(
            vmem_limit_bytes=32 * 1024 * 1024),
        cost_estimate=pl.CostEstimate(flops=flops, transcendentals=0,
                                      bytes_accessed=bytes_accessed),
    )(A, h0, e_agg, w1, b1, w2, b2, P, mask)


# ---------------------------------------------------------------------------
# Parameter init (deterministic, synthetic) and forward glue
# ---------------------------------------------------------------------------

NUM_ATOM_TYPE = 120
NUM_CHIRALITY_TAG = 3
NUM_BOND_TYPE = 6      # index 4 is the self-loop "bond type"
NUM_BOND_DIRECTION = 3


def init_params(key, num_layer, emb_dim):
    n_keys = 2 + num_layer * 10
    keys = iter(jax.random.split(key, n_keys))

    def nrm(shape, scale=0.1):
        return scale * jax.random.normal(next(keys), shape, dtype=jnp.float32)

    params = {
        "x_emb1": nrm((NUM_ATOM_TYPE, emb_dim)),
        "x_emb2": nrm((NUM_CHIRALITY_TAG, emb_dim)),
        "layers": [],
    }
    for _ in range(num_layer):
        params["layers"].append({
            "edge_emb1": nrm((NUM_BOND_TYPE, emb_dim)),
            "edge_emb2": nrm((NUM_BOND_DIRECTION, emb_dim)),
            "w1": nrm((emb_dim, 2 * emb_dim)),          # Linear(D, 2D) as x @ W
            "b1": nrm((1, 2 * emb_dim)),
            "w2": nrm((2 * emb_dim, emb_dim)),          # Linear(2D, D)
            "b2": nrm((1, emb_dim)),
            "bn_gamma": 1.0 + nrm((1, emb_dim)),
            "bn_beta": nrm((1, emb_dim)),
            "bn_mean": nrm((1, emb_dim)),
            "bn_var": 0.5 + jnp.abs(nrm((1, emb_dim))),
        })
    return params


def gnn_motifpred2_forward(params, x, edge_index, edge_attr, node_map, num_motifs):
    """x: (N,2) int atom features; edge_index: (2,E); edge_attr: (E,2);
    node_map: (N,) int motif assignment (data.map). Returns (num_motifs, emb_dim)."""
    N = x.shape[0]
    layers = params["layers"]

    # --- GINConv preprocessing: add self loops with edge_attr [4, 0] ---
    self_idx = jnp.arange(N, dtype=edge_index.dtype)
    ei = jnp.concatenate([edge_index, jnp.stack([self_idx, self_idx])], axis=1)
    self_attr = jnp.tile(jnp.array([[4, 0]], dtype=edge_attr.dtype), (N, 1))
    ea = jnp.concatenate([edge_attr, self_attr], axis=0)

    # dense adjacency: A[target, source] = multiplicity of edge source->target
    # (small integer multiplicities: exactly representable in bf16)
    A = jnp.zeros((N, N), jnp.float32).at[ei[1], ei[0]].add(1.0)
    A = A.astype(jnp.bfloat16)

    # atom input embedding
    h0 = (params["x_emb1"][x[:, 0]] + params["x_emb2"][x[:, 1]]).astype(jnp.float32)

    # per-layer edge embeddings, scatter-added onto target nodes (glue),
    # stacked along a leading layer axis; per-layer weights stacked likewise
    # with eval-mode BatchNorm folded into w2/b2.
    e_aggs, w1s, b1s, w2s, b2s = [], [], [], [], []
    for lp in layers:
        e_emb = lp["edge_emb1"][ea[:, 0]] + lp["edge_emb2"][ea[:, 1]]
        e_aggs.append(jax.ops.segment_sum(e_emb, ei[1], num_segments=N)
                      .astype(jnp.bfloat16))
        scale = lp["bn_gamma"] / jnp.sqrt(lp["bn_var"] + 1e-5)       # (1, D)
        shift = lp["bn_beta"] - lp["bn_mean"] * scale                # (1, D)
        w1s.append(lp["w1"].astype(jnp.bfloat16))
        b1s.append(lp["b1"].astype(jnp.float32))
        w2s.append((lp["w2"] * scale).astype(jnp.bfloat16))          # fold BN scale
        b2s.append((lp["b2"] * scale + shift).astype(jnp.float32))   # fold BN shift
    e_agg = jnp.stack(e_aggs)                                        # (L, N, D)  bf16
    w1 = jnp.stack(w1s)                                              # (L, D, 2D) bf16
    b1 = jnp.stack(b1s)                                              # (L, 1, 2D) f32
    w2 = jnp.stack(w2s)                                              # (L, 2D, D) bf16
    b2 = jnp.stack(b2s)                                              # (L, 1, D)  f32

    # scatter(..., dim=0, reduce='mean') over data.map as a pooling matmul.
    # P kept in f32 (pool matmul is tiny; avoids extra bf16 drift on 1/count).
    onehot = (node_map[None, :] == jnp.arange(num_motifs)[:, None]).astype(jnp.float32)
    counts = onehot.sum(axis=1, keepdims=True)
    P = onehot / jnp.maximum(counts, 1.0)                            # (M, N) f32
    mask = (counts > 0.0).astype(jnp.float32)                        # (M, 1) f32

    return fused_gnn_forward(A, h0, e_agg, w1, b1, w2, b2, P, mask)


# ---------------------------------------------------------------------------
# Demo
# ---------------------------------------------------------------------------

if __name__ == "__main__":
    key = jax.random.PRNGKey(0)
    N = 16            # nodes
    E = 32            # directed edges (before self loops)
    EMB_DIM = 128     # emb_dim (lane-aligned)
    NUM_LAYER = 2     # num_layer must be > 1
    NUM_MOTIFS = 8    # number of motif groups in data.map

    ks = jax.random.split(key, 8)
    x = jnp.stack([jax.random.randint(ks[0], (N,), 0, NUM_ATOM_TYPE),
                   jax.random.randint(ks[1], (N,), 0, NUM_CHIRALITY_TAG)], axis=1)
    edge_index = jax.random.randint(ks[2], (2, E), 0, N)
    edge_attr = jnp.stack([jax.random.randint(ks[3], (E,), 0, 4),
                           jax.random.randint(ks[4], (E,), 0, NUM_BOND_DIRECTION)], axis=1)
    node_map = jax.random.randint(ks[5], (N,), 0, NUM_MOTIFS)

    params = init_params(ks[6], NUM_LAYER, EMB_DIM)

    out = gnn_motifpred2_forward(params, x, edge_index, edge_attr, node_map, NUM_MOTIFS)
    jax.block_until_ready(out)
    assert out.shape == (NUM_MOTIFS, EMB_DIM) and out.dtype == jnp.float32
    assert bool(jnp.all(jnp.isfinite(out)))
    print("KERNEL_OK")
</pallas_src>

<mosaic_0001>
module attributes {stable_mosaic.version = 11 : i64} {
  func.func @fused_gnn_kernel(%arg0: memref<16x16xbf16, #tpu.memory_space<vmem>>, %arg1: memref<16x128xf32, #tpu.memory_space<vmem>>, %arg2: memref<2x16x128xbf16, #tpu.memory_space<vmem>>, %arg3: memref<2x128x256xbf16, #tpu.memory_space<vmem>>, %arg4: memref<2x1x256xf32, #tpu.memory_space<vmem>>, %arg5: memref<2x256x128xbf16, #tpu.memory_space<vmem>>, %arg6: memref<2x1x128xf32, #tpu.memory_space<vmem>>, %arg7: memref<8x16xf32, #tpu.memory_space<vmem>>, %arg8: memref<8x1xf32, #tpu.memory_space<vmem>>, %arg9: memref<8x128xf32, #tpu.memory_space<vmem>>) attributes {dimension_semantics = [], scalar_prefetch = 0 : i64, scratch_operands = 0 : i64, tpu.core_type = #tpu.core_type<tc>} {
    %c0 = arith.constant 0 : index
    %c0_0 = arith.constant 0 : index
    %0 = vector.load %arg1[%c0, %c0_0] : memref<16x128xf32, #tpu.memory_space<vmem>>, vector<16x128xf32>
    %c0_1 = arith.constant 0 : index
    %c0_2 = arith.constant 0 : index
    %1 = vector.load %arg0[%c0_1, %c0_2] : memref<16x16xbf16, #tpu.memory_space<vmem>>, vector<16x16xbf16>
    %2 = arith.truncf %0 : vector<16x128xf32> to vector<16x128xbf16>
    %cst = arith.constant dense<0.000000e+00> : vector<16x128xf32>
    %3 = tpu.matmul %1, %2, %cst {dimension_numbers = #tpu.dot_dimension_numbers<[1], [0], [0], [1], [0, 0, 1, 1], [], []>} : vector<16x16xbf16>, vector<16x128xbf16>, vector<16x128xf32> -> vector<16x128xf32>
    %c0_3 = arith.constant 0 : index
    %c0_4 = arith.constant 0 : index
    %c0_5 = arith.constant 0 : index
    %4 = vector.load %arg2[%c0_3, %c0_4, %c0_5] : memref<2x16x128xbf16, #tpu.memory_space<vmem>>, vector<1x16x128xbf16>
    %5 = vector.shape_cast %4 : vector<1x16x128xbf16> to vector<16x128xbf16>
    %6 = arith.extf %5 : vector<16x128xbf16> to vector<16x128xf32>
    %7 = arith.addf %3, %6 : vector<16x128xf32>
    %8 = arith.truncf %7 : vector<16x128xf32> to vector<16x128xbf16>
    %c0_6 = arith.constant 0 : index
    %c0_7 = arith.constant 0 : index
    %c0_8 = arith.constant 0 : index
    %9 = vector.load %arg3[%c0_6, %c0_7, %c0_8] : memref<2x128x256xbf16, #tpu.memory_space<vmem>>, vector<1x128x256xbf16>
    %10 = vector.shape_cast %9 : vector<1x128x256xbf16> to vector<128x256xbf16>
    %cst_9 = arith.constant dense<0.000000e+00> : vector<16x256xf32>
    %11 = tpu.matmul %8, %10, %cst_9 {dimension_numbers = #tpu.dot_dimension_numbers<[1], [0], [0], [1], [0, 0, 1, 1], [], []>} : vector<16x128xbf16>, vector<128x256xbf16>, vector<16x256xf32> -> vector<16x256xf32>
    %c0_10 = arith.constant 0 : index
    %c0_11 = arith.constant 0 : index
    %c0_12 = arith.constant 0 : index
    %12 = vector.load %arg4[%c0_10, %c0_11, %c0_12] : memref<2x1x256xf32, #tpu.memory_space<vmem>>, vector<1x1x256xf32>
    %13 = vector.shape_cast %12 : vector<1x1x256xf32> to vector<1x256xf32>
    %14 = vector.broadcast %13 : vector<1x256xf32> to vector<16x256xf32>
    %15 = arith.addf %11, %14 : vector<16x256xf32>
    %cst_13 = arith.constant 0.000000e+00 : f32
    %16 = vector.broadcast %cst_13 : f32 to vector<16x256xf32>
    %17 = arith.maximumf %15, %16 : vector<16x256xf32>
    %18 = arith.truncf %17 : vector<16x256xf32> to vector<16x256xbf16>
    %c0_14 = arith.constant 0 : index
    %c0_15 = arith.constant 0 : index
    %c0_16 = arith.constant 0 : index
    %19 = vector.load %arg5[%c0_14, %c0_15, %c0_16] : memref<2x256x128xbf16, #tpu.memory_space<vmem>>, vector<1x256x128xbf16>
    %20 = vector.shape_cast %19 : vector<1x256x128xbf16> to vector<256x128xbf16>
    %cst_17 = arith.constant dense<0.000000e+00> : vector<16x128xf32>
    %21 = tpu.matmul %18, %20, %cst_17 {dimension_numbers = #tpu.dot_dimension_numbers<[1], [0], [0], [1], [0, 0, 1, 1], [], []>} : vector<16x256xbf16>, vector<256x128xbf16>, vector<16x128xf32> -> vector<16x128xf32>
    %c0_18 = arith.constant 0 : index
    %c0_19 = arith.constant 0 : index
    %c0_20 = arith.constant 0 : index
    %22 = vector.load %arg6[%c0_18, %c0_19, %c0_20] : memref<2x1x128xf32, #tpu.memory_space<vmem>>, vector<1x1x128xf32>
    %23 = vector.shape_cast %22 : vector<1x1x128xf32> to vector<1x128xf32>
    %24 = vector.broadcast %23 : vector<1x128xf32> to vector<16x128xf32>
    %25 = arith.addf %21, %24 : vector<16x128xf32>
    %cst_21 = arith.constant 0.000000e+00 : f32
    %26 = vector.broadcast %cst_21 : f32 to vector<16x128xf32>
    %27 = arith.maximumf %25, %26 : vector<16x128xf32>
    %28 = arith.truncf %27 : vector<16x128xf32> to vector<16x128xbf16>
    %cst_22 = arith.constant dense<0.000000e+00> : vector<16x128xf32>
    %29 = tpu.matmul %1, %28, %cst_22 {dimension_numbers = #tpu.dot_dimension_numbers<[1], [0], [0], [1], [0, 0, 1, 1], [], []>} : vector<16x16xbf16>, vector<16x128xbf16>, vector<16x128xf32> -> vector<16x128xf32>
    %c1 = arith.constant 1 : index
    %c0_23 = arith.constant 0 : index
    %c0_24 = arith.constant 0 : index
    %30 = vector.load %arg2[%c1, %c0_23, %c0_24] : memref<2x16x128xbf16, #tpu.memory_space<vmem>>, vector<1x16x128xbf16>
    %31 = vector.shape_cast %30 : vector<1x16x128xbf16> to vector<16x128xbf16>
    %32 = arith.extf %31 : vector<16x128xbf16> to vector<16x128xf32>
    %33 = arith.addf %29, %32 : vector<16x128xf32>
    %34 = arith.truncf %33 : vector<16x128xf32> to vector<16x128xbf16>
    %c1_25 = arith.constant 1 : index
    %c0_26 = arith.constant 0 : index
    %c0_27 = arith.constant 0 : index
    %35 = vector.load %arg3[%c1_25, %c0_26, %c0_27] : memref<2x128x256xbf16, #tpu.memory_space<vmem>>, vector<1x128x256xbf16>
    %36 = vector.shape_cast %35 : vector<1x128x256xbf16> to vector<128x256xbf16>
    %cst_28 = arith.constant dense<0.000000e+00> : vector<16x256xf32>
    %37 = tpu.matmul %34, %36, %cst_28 {dimension_numbers = #tpu.dot_dimension_numbers<[1], [0], [0], [1], [0, 0, 1, 1], [], []>} : vector<16x128xbf16>, vector<128x256xbf16>, vector<16x256xf32> -> vector<16x256xf32>
    %c1_29 = arith.constant 1 : index
    %c0_30 = arith.constant 0 : index
    %c0_31 = arith.constant 0 : index
    %38 = vector.load %arg4[%c1_29, %c0_30, %c0_31] : memref<2x1x256xf32, #tpu.memory_space<vmem>>, vector<1x1x256xf32>
    %39 = vector.shape_cast %38 : vector<1x1x256xf32> to vector<1x256xf32>
    %40 = vector.broadcast %39 : vector<1x256xf32> to vector<16x256xf32>
    %41 = arith.addf %37, %40 : vector<16x256xf32>
    %cst_32 = arith.constant 0.000000e+00 : f32
    %42 = vector.broadcast %cst_32 : f32 to vector<16x256xf32>
    %43 = arith.maximumf %41, %42 : vector<16x256xf32>
    %c0_33 = arith.constant 0 : index
    %c0_34 = arith.constant 0 : index
    %44 = vector.load %arg7[%c0_33, %c0_34] : memref<8x16xf32, #tpu.memory_space<vmem>>, vector<8x16xf32>
    %cst_35 = arith.constant dense<0.000000e+00> : vector<8x256xf32>
    %45 = tpu.matmul %44, %43, %cst_35 {dimension_numbers = #tpu.dot_dimension_numbers<[1], [0], [0], [1], [0, 0, 1, 1], [], []>} : vector<8x16xf32>, vector<16x256xf32>, vector<8x256xf32> -> vector<8x256xf32>
    %46 = arith.truncf %45 : vector<8x256xf32> to vector<8x256xbf16>
    %c1_36 = arith.constant 1 : index
    %c0_37 = arith.constant 0 : index
    %c0_38 = arith.constant 0 : index
    %47 = vector.load %arg5[%c1_36, %c0_37, %c0_38] : memref<2x256x128xbf16, #tpu.memory_space<vmem>>, vector<1x256x128xbf16>
    %48 = vector.shape_cast %47 : vector<1x256x128xbf16> to vector<256x128xbf16>
    %cst_39 = arith.constant dense<0.000000e+00> : vector<8x128xf32>
    %49 = tpu.matmul %46, %48, %cst_39 {dimension_numbers = #tpu.dot_dimension_numbers<[1], [0], [0], [1], [0, 0, 1, 1], [], []>} : vector<8x256xbf16>, vector<256x128xbf16>, vector<8x128xf32> -> vector<8x128xf32>
    %c0_40 = arith.constant 0 : index
    %c0_41 = arith.constant 0 : index
    %50 = vector.load %arg8[%c0_40, %c0_41] : memref<8x1xf32, #tpu.memory_space<vmem>>, vector<8x1xf32>
    %c1_42 = arith.constant 1 : index
    %c0_43 = arith.constant 0 : index
    %c0_44 = arith.constant 0 : index
    %51 = vector.load %arg6[%c1_42, %c0_43, %c0_44] : memref<2x1x128xf32, #tpu.memory_space<vmem>>, vector<1x1x128xf32>
    %52 = vector.shape_cast %51 : vector<1x1x128xf32> to vector<1x128xf32>
    %53 = vector.broadcast %50 : vector<8x1xf32> to vector<8x128xf32>
    %54 = vector.broadcast %52 : vector<1x128xf32> to vector<8x128xf32>
    %55 = arith.mulf %53, %54 : vector<8x128xf32>
    %56 = arith.addf %49, %55 : vector<8x128xf32>
    %c0_45 = arith.constant 0 : index
    %c0_46 = arith.constant 0 : index
    %57 = vector.load %arg9[%c0_45, %c0_46] : memref<8x128xf32, #tpu.memory_space<vmem>>, vector<8x128xf32>
    tpu.vector_store %arg9[%c0_45, %c0_46], %56 {strides = array<i32>} : memref<8x128xf32, #tpu.memory_space<vmem>>, vector<8x128xf32>,
    return
  }
}

</mosaic_0001>

<bundles_post_ra>
// kernel: tpu_custom_call.1
= control target key start
LH: loop header
LB: loop body
LE: loop exit
PB: predicated region body
PF: predicated region fallthrough
CT: control target
= control target key end

     0   :  { %14 = vsyncpa [#allocation3], 0  ;;  %s1560_s0 = inlined_call_operand.hbm [shape: bf16[16,16], index: 0, kind: input, shape index: {}]   ;;  %s1561_s1 = inlined_call_operand.hbm [shape: f32[16,128], index: 1, kind: input, shape index: {}]   ;;  %s1562_s2 = inlined_call_operand.vmem [shape: bf16[2,16,128], index: 2, kind: input, shape index: {}]   ;;  %s1563_s3 = inlined_call_operand.hbm [shape: bf16[2,128,256], index: 3, kind: input, shape index: {}]   ;;  %s1564_s4 = inlined_call_operand.hbm [shape: f32[2,1,256], index: 4, kind: input, shape index: {}]   ;;  %s1565_s5 = inlined_call_operand.hbm [shape: bf16[2,256,128], index: 5, kind: input, shape index: {}]   ;;  %s1566_s6 = inlined_call_operand.vmem [shape: f32[2,1,128], index: 6, kind: input, shape index: {}]   ;;  %s1567_s7 = inlined_call_operand.vmem [shape: f32[8,16], index: 7, kind: input, shape index: {}]   ;;  %s1568_s8 = inlined_call_operand.vmem [shape: f32[8,1], index: 8, kind: input, shape index: {}]   ;;  %s1569_s9 = inlined_call_operand.hbm [shape: f32[8,128], index: 9, kind: output, shape index: {}]  }
   0x1   :  { %15 = vsyncpa [#allocation6], 0 }
   0x2   :  { %16 = vsyncpa [#allocation9], 0 }
   0x3   :  { %17 = vsyncpa [#allocation4], 0  ;;  %s1364_s30 = smov [#allocation5]   ;;  %s1224_s13 = scalar_lea.hbm %s1561_s1, 256 }
   0x4   :  { %s35_s10 = sshll.u32 %s1364_s30, 4  ;;  %p1225_p0 = scmp.ne.s32.totalorder %s1561_s1, %s1224_s13  ;;  %s36_s10 = int_to_ptr.vmem [resolvable:$true] %s35_s10 }
   0x5   :  { %p1228_p1 = scmp.lt.u32.totalorder %s1224_s13, %s1561_s1 }
   0x7   :  { %p1230_p2 = pnand %p1228_p1, %p1225_p0 }
   0x9   :  { %1233 = shalt.err (!%p1230_p2)
}
   0xa   :  { %s1234_s18 = scalar_lea.vmem %s36_s10, 256  ;;  %p1239_p4 = scmp.lt.s32.totalorder %s36_s10, %s36_s10 }
   0xb   :  { %p1235_p3 = scmp.ne.s32.totalorder %s36_s10, %s1234_s18  ;;  %p1240_p5 = scmp.lt.s32.totalorder %s1234_s18, %s1234_s18 }
   0xd   :  { %p1241_p6 = por %p1240_p5, %p1239_p4 }
   0xf   :  { %p1242_p7 = pnand %p1241_p6, %p1235_p3 }
  0x11   :  { %1245 = shalt.err (!%p1242_p7)
}
  0x12   :  { %s1365_s19 = smov 128   ;;  %s1366_s20 = smov 8  }
  0x13   :  { %41 = dma.hbm_to_vmem [thread:$0]  %s1561_s1, 256, %s36_s10, [#allocation6], %s1365_s19, %s1365_s19, %s1366_s20  }
  0x14   :  { %s1367_s23 = smov [#allocation8]   ;;  %s1246_s27 = scalar_lea.hbm %s1564_s4, 64 }
  0x15   :  { %s61_s24 = sshll.u32 %s1367_s23, 4  ;;  %p1247_p8 = scmp.ne.s32.totalorder %s1564_s4, %s1246_s27  ;;  %s62_s24 = int_to_ptr.vmem [resolvable:$true] %s61_s24 }
  0x16   :  { %p1250_p9 = scmp.lt.u32.totalorder %s1246_s27, %s1564_s4 }
  0x18   :  { %p1252_p10 = pnand %p1250_p9, %p1247_p8 }
  0x1a   :  { %1255 = shalt.err (!%p1252_p10)
}
  0x1b   :  { %s1256_s12 = scalar_lea.vmem %s62_s24, 64  ;;  %p1261_p12 = scmp.lt.s32.totalorder %s62_s24, %s62_s24 }
  0x1c   :  { %p1257_p11 = scmp.ne.s32.totalorder %s62_s24, %s1256_s12  ;;  %p1262_p13 = scmp.lt.s32.totalorder %s1256_s12, %s1256_s12 }
  0x1e   :  { %p1263_p0 = por %p1262_p13, %p1261_p12 }
  0x20   :  { %p1264_p1 = pnand %p1263_p0, %p1257_p11 }
  0x22   :  { %1267 = shalt.err (!%p1264_p1)
}
  0x23   :  { %s1368_s1 = smov 32   ;;  %s1369_s10 = smov 2  }
  0x24   :  { %67 = dma.hbm_to_vmem [thread:$0]  %s1564_s4, 64, %s62_s24, [#allocation9], %s1368_s1, %s1368_s1, %s1369_s10  }
  0x25   :  { %s1370_s15 = smov [#allocation2]   ;;  %s1268_s21 = scalar_lea.hbm %s1560_s0, 128 }
  0x26   :  { %s23_s16 = sshll.u32 %s1370_s15, 4  ;;  %p1269_p2 = scmp.ne.s32.totalorder %s1560_s0, %s1268_s21  ;;  %s24_s16 = int_to_ptr.vmem [resolvable:$true] %s23_s16 }
  0x27   :  { %p1272_p3 = scmp.lt.u32.totalorder %s1268_s21, %s1560_s0 }
  0x29   :  { %p1274_p4 = pnand %p1272_p3, %p1269_p2 }
  0x2b   :  { %1277 = shalt.err (!%p1274_p4)
}
  0x2c   :  { %s1278_s27 = scalar_lea.vmem %s24_s16, 128  ;;  %p1283_p6 = scmp.lt.s32.totalorder %s24_s16, %s24_s16 }
  0x2d   :  { %p1279_p5 = scmp.ne.s32.totalorder %s24_s16, %s1278_s27  ;;  %p1284_p7 = scmp.lt.s32.totalorder %s1278_s27, %s1278_s27 }
  0x2f   :  { %p1285_p8 = por %p1284_p7, %p1283_p6 }
  0x31   :  { %p1286_p9 = pnand %p1285_p8, %p1279_p5 }
  0x33   :  { %1289 = shalt.err (!%p1286_p9)
}
  0x34   :  { %s1371_s4 = smov 64   ;;  %s1372_s24 = smov 4  }
  0x35   :  { %29 = dma.hbm_to_vmem [thread:$0]  %s1560_s0, 128, %s24_s16, [#allocation3], %s1371_s4, %s1371_s4, %s1372_s24  }
  0x36   :  { %s1373_s30 = smov [#allocation7]   ;;  %s1374_s12 = smov [#allocation10]  }
  0x37   :  { %s49_s11 = sshll.u32 %s1373_s30, 4  ;;  %s73_s1 = sshll.u32 %s1374_s12, 4  ;;  %s50_s11 = int_to_ptr.vmem [resolvable:$true] %s49_s11  ;;  %s74_s1 = int_to_ptr.vmem [resolvable:$true] %s73_s1 }
  0x38   :  { %s1290_s14 = scalar_lea.hbm %s1563_s3, 4096 }
  0x39   :  { %p1291_p10 = scmp.ne.s32.totalorder %s1563_s3, %s1290_s14  ;;  %p1294_p11 = scmp.lt.u32.totalorder %s1290_s14, %s1563_s3 }
  0x3b   :  { %p1296_p12 = pnand %p1294_p11, %p1291_p10 }
  0x3d   :  { %1299 = shalt.err (!%p1296_p12)
}
  0x3e   :  { %s1300_s0 = scalar_lea.vmem %s50_s11, 4096  ;;  %p1305_p0 = scmp.lt.s32.totalorder %s50_s11, %s50_s11 }
  0x3f   :  { %p1301_p13 = scmp.ne.s32.totalorder %s50_s11, %s1300_s0  ;;  %p1306_p1 = scmp.lt.s32.totalorder %s1300_s0, %s1300_s0 }
  0x41   :  { %p1307_p2 = por %p1306_p1, %p1305_p0 }
  0x43   :  { %p1308_p3 = pnand %p1307_p2, %p1301_p13 }
  0x45   :  { %1311 = shalt.err (!%p1308_p3)
}
  0x46   :  { %55 = dma.hbm_to_vmem [thread:$0]  %s1563_s3, 4096, %s50_s11, [#allocation6], %s1365_s19, %s1365_s19, %s1366_s20  }
  0x47   :  { %s1312_s26 = scalar_lea.hbm %s1565_s5, 4096 }
  0x48   :  { %p1313_p4 = scmp.ne.s32.totalorder %s1565_s5, %s1312_s26  ;;  %p1316_p5 = scmp.lt.u32.totalorder %s1312_s26, %s1565_s5 }
  0x4a   :  { %p1318_p6 = pnand %p1316_p5, %p1313_p4 }
  0x4c   :  { %1321 = shalt.err (!%p1318_p6)
}
  0x4d   :  { %s1322_s12 = scalar_lea.vmem %s74_s1, 4096  ;;  %p1327_p8 = scmp.lt.s32.totalorder %s74_s1, %s74_s1 }
  0x4e   :  { %p1323_p7 = scmp.ne.s32.totalorder %s74_s1, %s1322_s12  ;;  %p1328_p9 = scmp.lt.s32.totalorder %s1322_s12, %s1322_s12 }
  0x50   :  { %p1329_p10 = por %p1328_p9, %p1327_p8 }
  0x52   :  { %p1330_p11 = pnand %p1329_p10, %p1323_p7 }
  0x54   :  { %1333 = shalt.err (!%p1330_p11)
}
  0x55   :  { %79 = dma.hbm_to_vmem [thread:$0]  %s1565_s5, 4096, %s74_s1, [#allocation9], %s1371_s4, %s1371_s4, %s1372_s24  }
  0x56   :  { %1356 = dma.done.wait [#allocation3], 128  }
  0x57   :  { %1357 = vsyncadd [#allocation3], 4294967168 }
  0x58   :  { %1358 = dma.done.wait [#allocation6], 4352  }
  0x59   :  { %1359 = vsyncadd [#allocation6], 4294962944 }
  0x5a   :  { %1360 = dma.done.wait [#allocation9], 4160  }
  0x5b   :  { %1361 = vsyncadd [#allocation9], 4294963136  ;;  %v1375_v0 = vmov 0.0   ;;  %vm1376_vm0 = vmmov 0   ;;  %v102_v1 = vld [vmem:[#allocation5] sm:$0xff]  ;;  %v103_v2 = vld [vmem:[#allocation5 + $0x8] sm:$0xff]  ;;  %v180_v48 = vlaneseq }
  0x5c   :  { %1111 = vmatprep.subr.bf16.mxu0 %v1375_v0  ;;  %1113 = vmatprep.mubr.msk.bf16.mxu0 %vm1376_vm0, %v1375_v0  ;;  %v106_v3 = vpack.c.bf16 %v103_v2, %v102_v1  ;;  %v1504_v4 = vld [vmem:[#allocation2] sm:$0xff]   ;;  %vm116_vm1 = vcmask 130048   ;;  %v1147_v7 = vld [vmem:[#allocation7 + $0x14] ss:$8 sps:$4 sm:$0xff]   ;;  %v1149_v8 = vld [vmem:[#allocation7 + $0x10] ss:$8 sps:$4 sm:$0xff]  }
  0x5d   :  { %v1144_v5 = vld [vmem:[#allocation7 + $0x4] ss:$8 sps:$4 sm:$0xff]   ;;  %v1146_v6 = vld [vmem:[#allocation7] ss:$8 sps:$4 sm:$0xff]   ;;  %v1153_v11 = vld [vmem:[#allocation7 + $0x34] ss:$8 sps:$4 sm:$0xff]  }
  0x5e   :  { %1112 = vmatpush3.bf16.msra.mxu0 %v106_v3  ;;  %270 = vmatprep.subr.bf16.mxu1 %v1144_v5  ;;  %v1150_v9 = vld [vmem:[#allocation7 + $0x24] ss:$8 sps:$4 sm:$0xff]   ;;  %v1152_v10 = vld [vmem:[#allocation7 + $0x20] ss:$8 sps:$4 sm:$0xff]   ;;  %v1155_v12 = vld [vmem:[#allocation7 + $0x30] ss:$8 sps:$4 sm:$0xff]  }
  0x5f   :  { %271 = vmatpush1.bf16.msra.mxu1 %v1146_v6  ;;  %v1156_v13 = vld [vmem:[#allocation7 + $0x44] ss:$8 sps:$4 sm:$0xff]   ;;  %v1158_v14 = vld [vmem:[#allocation7 + $0x40] ss:$8 sps:$4 sm:$0xff]   ;;  %v1159_v15 = vld [vmem:[#allocation7 + $0x54] ss:$8 sps:$4 sm:$0xff]  }
  0x60   :  { %272 = vmatprep.subr.bf16.mxu1 %v1147_v7  ;;  %v1161_v16 = vld [vmem:[#allocation7 + $0x50] ss:$8 sps:$4 sm:$0xff]   ;;  %v1162_v17 = vld [vmem:[#allocation7 + $0x64] ss:$8 sps:$4 sm:$0xff]   ;;  %v1164_v18 = vld [vmem:[#allocation7 + $0x60] ss:$8 sps:$4 sm:$0xff]  }
  0x61   :  { %1114 = vmatmul.mubr.msk.bf16.vlgmr.msra.gmra.mrb[0].mxu0 %vm116_vm1, %v1504_v4  ;;  %v1165_v19 = vld [vmem:[#allocation7 + $0x74] ss:$8 sps:$4 sm:$0xff]   ;;  %v1167_v20 = vld [vmem:[#allocation7 + $0x70] ss:$8 sps:$4 sm:$0xff]   ;;  %v1377_v21 = vmov 0   ;;  %v1168_v22 = vld [vmem:[#allocation10 + $0x40] sm:$0xff]  }
  0x62   :  { %302 = vmatprep.mubr.bf16.mxu1 %v1377_v21  ;;  %1142 = vset.pattern.permute.xlu0 %v1377_v21  ;;  %v1169_v23 = vld [vmem:[#allocation10] sm:$0xff]   ;;  %v1170_v24 = vld [vmem:[#allocation10 + $0x48] sm:$0xff]   ;;  %v1172_v26 = vld [vmem:[#allocation10 + $0x50] sm:$0xff]   ;;  %v1516_v49 = vshrl.u32 %v180_v48, 7 }
  0x63   :  { %273 = vmatpush1.bf16.msra.mxu1 %v1149_v8  ;;  %1065 = vmatprep.subr.bf16.mxu0 %v1168_v22  ;;  %v1171_v25 = vld [vmem:[#allocation10 + $0x8] sm:$0xff]   ;;  %v1173_v27 = vld [vmem:[#allocation10 + $0x10] sm:$0xff]   ;;  %v1174_v28 = vld [vmem:[#allocation10 + $0x58] sm:$0xff]  }
  0x64   :  { %274 = vmatprep.subr.bf16.mxu1 %v1150_v9  ;;  %1066 = vmatpush3.bf16.msra.mxu0 %v1169_v23  ;;  %v1175_v29 = vld [vmem:[#allocation10 + $0x18] sm:$0xff]   ;;  %v1176_v30 = vld [vmem:[#allocation10 + $0x60] sm:$0xff]   ;;  %v1178_v32 = vld [vmem:[#allocation10 + $0x68] sm:$0xff]   ;;  %v182_v50 = vsub.s32 0, %v1516_v49  ;;  %v186_v52 = vsub.s32 1, %v1516_v49 }
  0x65   :  { %1067 = vmatprep.subr.bf16.mxu0 %v1170_v24  ;;  %v1177_v31 = vld [vmem:[#allocation10 + $0x20] sm:$0xff]   ;;  %v1179_v43 = vld [vmem:[#allocation10 + $0x28] sm:$0xff]   ;;  %v1180_v44 = vld [vmem:[#allocation10 + $0x70] sm:$0xff]  }
  0x66   :  { %v1055_v33 = vld [vmem:[%s1562_s2] sm:$0xff]   ;;  %v1181_v45 = vld [vmem:[#allocation10 + $0x30] sm:$0xff]   ;;  %v1182_v46 = vld [vmem:[#allocation10 + $0x78] sm:$0xff]  }
  0x67   :  { %275 = vmatpush1.bf16.msra.mxu1 %v1152_v10  ;;  %v1056_v34 = vunpack.c.l.bf16 %v1055_v33  ;;  %v1057_v35 = vunpack.c.h.bf16 %v1055_v33  ;;  %v1183_v47 = vld [vmem:[#allocation10 + $0x38] sm:$0xff]   ;;  %v1186_v8 = vld [vmem:[#allocation7 + $0x84] ss:$8 sps:$4 sm:$0xff]   ;;  %v1187_v10 = vld [vmem:[#allocation7 + $0x90] ss:$8 sps:$4 sm:$0xff]  }
  0x68   :  { %276 = vmatprep.subr.bf16.mxu1 %v1153_v11  ;;  %1068 = vmatpush3.bf16.msra.mxu0 %v1171_v25  ;;  %v178_v51 = vld [vmem:[#allocation8] sm:$0x3]  ;;  %v1189_v9 = vld [vmem:[#allocation7 + $0x94] ss:$8 sps:$4 sm:$0xff]   ;;  %v1192_v11 = vld [vmem:[#allocation7 + $0xa4] ss:$8 sps:$4 sm:$0xff]  }
  0x69   :  { %1069 = vmatprep.subr.bf16.mxu0 %v1172_v26  ;;  %v183_v53 = vrot.slane %v178_v51, %v182_v50  ;;  %v187_v54 = vrot.slane %v178_v51, %v186_v52  ;;  %v1184_v7 = vld [vmem:[#allocation7 + $0x80] ss:$8 sps:$4 sm:$0xff]   ;;  %v1207_v33 = vld [vmem:[#allocation7 + $0xf4] ss:$8 sps:$4 sm:$0xff]  }
  0x6a   :  { %v999_v22 = vld [vmem:[%s1566_s6] ss:$0 sm:$0xff]  ;;  %v1212_v48 = vld [vmem:[#allocation10 + $0xd0] sm:$0xff]  }
  0x6b   :  { %277 = vmatpush1.bf16.msra.mxu1 %v1155_v12  ;;  %v1190_v12 = vld [vmem:[#allocation7 + $0xa0] ss:$8 sps:$4 sm:$0xff]   ;;  %v1213_v51 = vld [vmem:[#allocation10 + $0x90] sm:$0xff]  }
  0x6c   :  { %278 = vmatprep.subr.bf16.mxu1 %v1156_v13  ;;  %1070 = vmatpush3.bf16.msra.mxu0 %v1173_v27  ;;  %v1195_v13 = vld [vmem:[#allocation7 + $0xb4] ss:$8 sps:$4 sm:$0xff]   ;;  %v702_v49 = vld [vmem:[%s1567_s7] sm:$0xff]  ;;  %s1378_s7 = smov [#allocation11]  }
  0x6d   :  { %1071 = vmatprep.subr.bf16.mxu0 %v1174_v28  ;;  %s970_s18 = sshll.u32 %s1378_s7, 4  ;;  %s971_s18 = int_to_ptr.vmem [resolvable:$true] %s970_s18 }
  0x6e   :  { %p1339_p13 = scmp.lt.s32.totalorder %s971_s18, %s971_s18 }
  0x6f   :  { %279 = vmatpush1.bf16.msra.mxu1 %v1158_v14  ;;  %v1193_v14 = vld [vmem:[#allocation7 + $0xb0] ss:$8 sps:$4 sm:$0xff]  }
  0x70   :  { %280 = vmatprep.subr.bf16.mxu1 %v1159_v15  ;;  %1072 = vmatpush3.bf16.msra.mxu0 %v1175_v29  ;;  %v1198_v15 = vld [vmem:[#allocation7 + $0xc4] ss:$8 sps:$4 sm:$0xff]  }
  0x71   :  { %1073 = vmatprep.subr.bf16.mxu0 %v1176_v30 }
  0x73   :  { %281 = vmatpush1.bf16.msra.mxu1 %v1161_v16  ;;  %v1196_v16 = vld [vmem:[#allocation7 + $0xc0] ss:$8 sps:$4 sm:$0xff]  }
  0x74   :  { %282 = vmatprep.subr.bf16.mxu1 %v1162_v17  ;;  %1074 = vmatpush3.bf16.msra.mxu0 %v1177_v31  ;;  %v1201_v17 = vld [vmem:[#allocation7 + $0xd4] ss:$8 sps:$4 sm:$0xff]  }
  0x75   :  { %1075 = vmatprep.subr.bf16.mxu0 %v1178_v32 }
  0x77   :  { %283 = vmatpush1.bf16.msra.mxu1 %v1164_v18  ;;  %v1199_v18 = vld [vmem:[#allocation7 + $0xd0] ss:$8 sps:$4 sm:$0xff]  }
  0x78   :  { %284 = vmatprep.subr.bf16.mxu1 %v1165_v19  ;;  %1076 = vmatpush3.bf16.msra.mxu0 %v1179_v43  ;;  %v1204_v19 = vld [vmem:[#allocation7 + $0xe4] ss:$8 sps:$4 sm:$0xff]  }
  0x79   :  { %1077 = vmatprep.subr.bf16.mxu0 %v1180_v44 }
  0x7b   :  { %285 = vmatpush1.bf16.msra.mxu1 %v1167_v20  ;;  %v1202_v20 = vld [vmem:[#allocation7 + $0xe0] ss:$8 sps:$4 sm:$0xff]  }
  0x7c   :  { %1117 = vmatprep.subr.bf16.mxu1 %v1375_v0  ;;  %1078 = vmatpush3.bf16.msra.mxu0 %v1181_v45  ;;  %v1209_v45 = vld [vmem:[#allocation10 + $0x80] sm:$0xff]  }
  0x7d   :  { %1079 = vmatprep.subr.bf16.mxu0 %v1182_v46  ;;  %v1210_v46 = vld [vmem:[#allocation10 + $0xc8] sm:$0xff]  }
  0x80   :  { %1080 = vmatpush3.bf16.msra.mxu0 %v1183_v47  ;;  %v1211_v47 = vld [vmem:[#allocation10 + $0x88] sm:$0xff]  }
  0x81   :  { %655 = vmatprep.subr.bf16.mxu0 %v1186_v8 }
 0x134   :  { %v154_v36 = vpop.f32.mrb[0].mxu0 }
 0x135   :  { %v1115_v37 = vpop.f32.mrb[1].mxu0  ;;  %v155_v39 = vadd.f32 %v1056_v34, %v154_v36  ;;  %v1205_v34 = vld [vmem:[#allocation7 + $0xf0] ss:$8 sps:$4 sm:$0xff]  }
 0x136   :  { %v157_v38 = vpop.f32.mrb[2].mxu0 }
 0x137   :  { %v158_v40 = vadd.f32 %v1057_v35, %v157_v38  ;;  %v1116_v41 = vpop.f32.mrb[3].mxu0  ;;  %v1062_v35 = vld [vmem:[%s1562_s2 + $0x8] sm:$0xff]  }
 0x138   :  { %v1060_v36 = vunpack.c.l.bf16 %v1062_v35  ;;  %v1061_v37 = vunpack.c.h.bf16 %v1062_v35 }
 0x139   :  { %v161_v42 = vpack.c.bf16 %v158_v40, %v155_v39 }
 0x13b   :  { %303 = vmatmul.mubr.bf16.vlgmr.msra.gmra.mrb[0].mxu1 %v161_v42 }
 0x13c   :  { %1119 = vmatprep.mubr.msk.bf16.mxu1 %vm1376_vm0, %v1375_v0 }
 0x20e   :  { %v304_v55 = vpop.f32.mrb[0].mxu1 }
 0x20f   :  { %v305_v56 = vadd.f32 %v304_v55, %v183_v53  ;;  %v306_v57 = vpop.f32.mrb[1].mxu1  ;;  %v1216_v55 = vld [vmem:[#allocation10 + $0xe0] sm:$0xff]  }
 0x210   :  { %v307_v58 = vadd.f32 %v306_v57, %v187_v54  ;;  %v308_v59 = vpop.f32.mrb[2].mxu1  ;;  %v1219_v57 = vld [vmem:[#allocation10 + $0xa8] sm:$0xff]  }
 0x211   :  { %v309_v60 = vadd.f32 %v308_v59, %v183_v53  ;;  %v310_v61 = vpop.f32.mrb[3].mxu1  ;;  %v313_v63 = vmax.f32 %v305_v56, 0.0  ;;  %v1214_v53 = vld [vmem:[#allocation10 + $0xd8] sm:$0xff]   ;;  %v1217_v56 = vld [vmem:[#allocation10 + $0xa0] sm:$0xff]   ;;  %v1221_v59 = vld [vmem:[#allocation10 + $0xb0] sm:$0xff]  }
 0x212   :  { %v311_v62 = vadd.f32 %v310_v61, %v187_v54  ;;  %v314_v2 = vmax.f32 %v307_v58, 0.0  ;;  %v1215_v54 = vld [vmem:[#allocation10 + $0x98] sm:$0xff]   ;;  %v1220_v58 = vld [vmem:[#allocation10 + $0xf0] sm:$0xff]  }
 0x213   :  { %v315_v1 = vmax.f32 %v309_v60, 0.0  ;;  %v563_v60 = vld [vmem:[#allocation8 + $0x2] sm:$0x3] }
 0x214   :  { %v316_v3 = vmax.f32 %v311_v62, 0.0  ;;  %v568_v61 = vrot.slane %v563_v60, %v182_v50  ;;  %v572_v62 = vrot.slane %v563_v60, %v186_v52  ;;  %v1222_v50 = vld [vmem:[#allocation10 + $0xf8] sm:$0xff]  }
 0x215   :  { %v317_v5 = vpack.c.bf16 %v315_v1, %v313_v63  ;;  %v1223_v52 = vld [vmem:[#allocation10 + $0xb8] sm:$0xff]  }
 0x216   :  { %v318_v6 = vpack.c.bf16 %v316_v3, %v314_v2 }
 0x218   :  { %486 = vmatprep.mubr.bf16.mxu0 %v318_v6 }
 0x219   :  { %487 = vmatmul.mubr.bf16.vlgmr.msra.gmra.mrb[4].mxu0 %v317_v5 }
 0x21a   :  { %687 = vmatprep.mubr.bf16.mxu0 %v1377_v21  ;;  %656 = vmatpush1.bf16.msra.mxu0 %v1184_v7 }
 0x21b   :  { %657 = vmatprep.subr.bf16.mxu0 %v1189_v9 }
 0x21e   :  { %658 = vmatpush1.bf16.msra.mxu0 %v1187_v10 }
 0x21f   :  { %659 = vmatprep.subr.bf16.mxu0 %v1192_v11 }
 0x222   :  { %660 = vmatpush1.bf16.msra.mxu0 %v1190_v12 }
 0x223   :  { %661 = vmatprep.subr.bf16.mxu0 %v1195_v13 }
 0x226   :  { %662 = vmatpush1.bf16.msra.mxu0 %v1193_v14 }
 0x227   :  { %663 = vmatprep.subr.bf16.mxu0 %v1198_v15  ;;  %v812_v15 = vld [vmem:[%s1568_s8] sm:$0xff]  ;;  %s1334_s8 = scalar_lea.vmem %s971_s18, 128 }
 0x228   :  { %817 = vperm.xlu0 %1142, %v812_v15   ;;  %p1335_p12 = scmp.ne.s32.totalorder %s971_s18, %s1334_s8  ;;  %p1340_p0 = scmp.lt.s32.totalorder %s1334_s8, %s1334_s8 }
 0x22a   :  { %664 = vmatpush1.bf16.msra.mxu0 %v1196_v16  ;;  %p1341_p1 = por %p1340_p0, %p1339_p13 }
 0x22b   :  { %665 = vmatprep.subr.bf16.mxu0 %v1201_v17 }
 0x22c   :  { %p1342_p2 = pnand %p1341_p1, %p1335_p12 }
 0x22e   :  { %666 = vmatpush1.bf16.msra.mxu0 %v1199_v18 }
 0x22f   :  { %667 = vmatprep.subr.bf16.mxu0 %v1204_v19 }
 0x232   :  { %668 = vmatpush1.bf16.msra.mxu0 %v1202_v20  ;;  %v1037_v20 = vld [vmem:[%s1566_s6 + $0x1] ss:$0 sm:$0xff] }
 0x233   :  { %669 = vmatprep.subr.bf16.mxu0 %v1207_v33 }
 0x236   :  { %670 = vmatpush1.bf16.msra.mxu0 %v1205_v34 }
 0x2ec   :  { %v1081_v21 = vpop.f32.mrb[4].mxu0 }
 0x2ed   :  { %v1082_v23 = vpop.f32.mrb[5].mxu0 }
 0x2ee   :  { %v1083_v24 = vadd.f32 %v1082_v23, %v1081_v21  ;;  %v1084_v25 = vpop.f32.mrb[6].mxu0  ;;  %v818_v21 = vpop.permute.xlu0 %817 }
 0x2ef   :  { %v1085_v26 = vpop.f32.mrb[7].mxu0  ;;  %v826_v23 = vmul.f32 %v1037_v20, %v818_v21 }
 0x2f0   :  { %v489_v27 = vadd.f32 %v1083_v24, %v999_v22  ;;  %v1086_v28 = vadd.f32 %v1085_v26, %v1084_v25 }
 0x2f2   :  { %v492_v29 = vadd.f32 %v1086_v28, %v999_v22  ;;  %v495_v30 = vmax.f32 %v489_v27, 0.0 }
 0x2f4   :  { %v496_v31 = vmax.f32 %v492_v29, 0.0 }
 0x2f6   :  { %v497_v32 = vpack.c.bf16 %v496_v31, %v495_v30 }
 0x2f8   :  { %1118 = vmatpush3.bf16.msra.mxu1 %v497_v32 }
 0x2fb   :  { %1120 = vmatmul.mubr.msk.bf16.vlgmr.msra.gmra.mrb[4].mxu1 %vm116_vm1, %v1504_v4  ;;  %v1208_v4 = vld [vmem:[#allocation10 + $0xc0] sm:$0xff]  }
 0x2fc   :  { %1089 = vmatprep.subr.bf16.mxu1 %v1208_v4 }
 0x2fd   :  { %1090 = vmatpush3.bf16.msra.mxu1 %v1209_v45 }
 0x2fe   :  { %1091 = vmatprep.subr.bf16.mxu1 %v1210_v46 }
 0x301   :  { %1092 = vmatpush3.bf16.msra.mxu1 %v1211_v47 }
 0x302   :  { %1093 = vmatprep.subr.bf16.mxu1 %v1212_v48 }
 0x305   :  { %1094 = vmatpush3.bf16.msra.mxu1 %v1213_v51 }
 0x306   :  { %1095 = vmatprep.subr.bf16.mxu1 %v1214_v53 }
 0x309   :  { %1096 = vmatpush3.bf16.msra.mxu1 %v1215_v54 }
 0x30a   :  { %1097 = vmatprep.subr.bf16.mxu1 %v1216_v55 }
 0x30d   :  { %1098 = vmatpush3.bf16.msra.mxu1 %v1217_v56 }
 0x3ce   :  { %v537_v38 = vpop.f32.mrb[4].mxu1 }
 0x3cf   :  { %v1121_v39 = vpop.f32.mrb[5].mxu1  ;;  %v538_v41 = vadd.f32 %v1060_v36, %v537_v38 }
 0x3d0   :  { %v540_v40 = vpop.f32.mrb[6].mxu1 }
 0x3d1   :  { %v541_v42 = vadd.f32 %v1061_v37, %v540_v40  ;;  %v1122_v43 = vpop.f32.mrb[7].mxu1 }
 0x3d3   :  { %v544_v44 = vpack.c.bf16 %v541_v42, %v538_v41 }
 0x3d5   :  { %688 = vmatmul.mubr.bf16.vlgmr.msra.gmra.mrb[8].mxu0 %v544_v44 }
 0x3d6   :  { %770 = vmatprep.mubr.f32.mxu0 %v1375_v0  ;;  %v1218_v0 = vld [vmem:[#allocation10 + $0xe8] sm:$0xff]  }
 0x3d7   :  { %1099 = vmatprep.subr.bf16.mxu1 %v1218_v0 }
 0x3d8   :  { %1100 = vmatpush3.bf16.msra.mxu1 %v1219_v57 }
 0x3d9   :  { %1101 = vmatprep.subr.bf16.mxu1 %v1220_v58 }
 0x3dc   :  { %1102 = vmatpush3.bf16.msra.mxu1 %v1221_v59 }
 0x3dd   :  { %1103 = vmatprep.subr.bf16.mxu1 %v1222_v50 }
 0x3e0   :  { %1104 = vmatpush3.bf16.msra.mxu1 %v1223_v52 }
 0x4a8   :  { %v689_v63 = vpop.f32.mrb[8].mxu0 }
 0x4a9   :  { %v690_v1 = vadd.f32 %v689_v63, %v568_v61  ;;  %v691_v2 = vpop.f32.mrb[9].mxu0 }
 0x4aa   :  { %v692_v3 = vadd.f32 %v691_v2, %v572_v62  ;;  %v693_v5 = vpop.f32.mrb[10].mxu0 }
 0x4ab   :  { %v694_v6 = vadd.f32 %v693_v5, %v568_v61  ;;  %v695_v7 = vpop.f32.mrb[11].mxu0  ;;  %v698_v9 = vmax.f32 %v690_v1, 0.0 }
 0x4ac   :  { %v696_v8 = vadd.f32 %v695_v7, %v572_v62  ;;  %v699_v11 = vmax.f32 %v692_v3, 0.0 }
 0x4ad   :  { %v700_v10 = vmax.f32 %v694_v6, 0.0 }
 0x4ae   :  { %v701_v12 = vmax.f32 %v696_v8, 0.0 }
 0x4af   :  { %v1125_v13 = vpack.c.bf16 %v700_v10, %v698_v9 }
 0x4b0   :  { %v1123_v14 = vpack.c.bf16 %v701_v12, %v699_v11 }
 0x4b2   :  { %1124 = vmatprep.subr.bf16.mxu0 %v1123_v14 }
 0x4b3   :  { %1126 = vmatpush1.bf16.msra.mxu0 %v1125_v13 }
 0x4b6   :  { %1035 = vmatmul.mubr.msk.f32.vlgmr.msra.gmra.mrb[12].mxu0 %vm116_vm1, %v702_v49 }
 0x589   :  { %v772_v16 = vpop.f32.mrb[12].mxu0 }
 0x58a   :  { %v774_v17 = vpop.f32.mrb[13].mxu0  ;;  %v777_v19 = vpack.c.bf16 %v772_v16, %v772_v16 }
 0x58b   :  { %v778_v18 = vpack.c.bf16 %v774_v17, %v774_v17 }
 0x58d   :  { %955 = vmatprep.mubr.bf16.mxu1 %v778_v18 }
 0x58e   :  { %956 = vmatmul.mubr.bf16.vlgmr.msra.gmra.mrb[8].mxu1 %v777_v19 }
 0x661   :  { %v1105_v22 = vpop.f32.mrb[8].mxu1 }
 0x662   :  { %v1106_v24 = vpop.f32.mrb[9].mxu1 }
 0x663   :  { %v1107_v25 = vadd.f32 %v1106_v24, %v1105_v22  ;;  %v1108_v26 = vpop.f32.mrb[10].mxu1 }
 0x664   :  { %v1109_v27 = vpop.f32.mrb[11].mxu1 }
 0x665   :  { %v958_v28 = vadd.f32 %v1107_v25, %v826_v23 }
 0x667   :  { %963 = vst [vmem:[#allocation11] sm:$0xff] %v958_v28 }
 0x668   :  { %1345 = shalt.err (!%p1342_p2)
}
 0x669   :  { %s1346_s0 = scalar_lea.hbm %s1569_s9, 128 }
 0x66a   :  { %p1347_p3 = scmp.ne.s32.totalorder %s1569_s9, %s1346_s0  ;;  %p1350_p4 = scmp.lt.u32.totalorder %s1346_s0, %s1569_s9 }
 0x66c   :  { %p1352_p5 = pnand %p1350_p4, %p1347_p3 }
 0x66e   :  { %1355 = shalt.err (!%p1352_p5)
}
 0x66f   :  { %973 = dma.vmem_to_hbm [thread:$0]  %s971_s18, 128, %s1569_s9, [#allocation4]  }
 0x670   :  { %1362 = dma.done.wait [#allocation4], 128  }
 0x671   :  { %1363 = vsyncadd [#allocation4], 4294967168 }
 0x672   :  { %977 = vsyncpa [#allocation3], 1 }
 0x673   :  { %978 = vsyncpa [#allocation6], 1 }
 0x674   :  { %979 = vsyncpa [#allocation9], 1 }
 0x675   :  { %980 = vsyncpa [#allocation4], 1 }

</bundles_post_ra>
